<compile_context>
chip_gen: v6e
topology: v6e:2x2x1
jax: 0.10.0
libtpu: 0.0.40
codegen_flags: <defaults>
</compile_context>

<pallas_src>
import numpy as np
import jax
import jax.numpy as jnp
from jax import lax
from jax.experimental import pallas as pl
from jax.experimental.pallas import tpu as pltpu

HIGHEST = jax.lax.Precision.HIGHEST   # wrapper-side only


# ------------------------------ fused kernel --------------------------------

def _make_kernel(t_hw, n_hw, hw, cf, with_mask):
    inv_hw = 1.0 / hw
    inv_cf = 1.0 / cf

    def body(p_ref, wm_ref, *rest):
        if with_mask:
            wsel_ref, pooled_ref, mask_ref = rest
        else:
            (pooled_ref,) = rest
        t = pl.program_id(1)

        @pl.when(t == 0)
        def _init():
            pooled_ref[...] = jnp.zeros_like(pooled_ref)

        # --- stem conv tile (im2col matmul) + swish; stays in VMEM ----------
        # default MXU precision (single bf16 pass), f32 accumulation.
        y = jnp.dot(p_ref[0], wm_ref[...],
                    preferred_element_type=jnp.float32)            # (t_hw, Cf)
        feat = y * jax.nn.sigmoid(y)

        # --- global-average-pool partial sum (ones matmul -> MXU, exact) ----
        ones_row = jnp.ones((1, t_hw), jnp.float32)
        pooled_ref[0] += jnp.dot(ones_row, feat,
                                 preferred_element_type=jnp.float32)  # (1, Cf)

        if with_mask:
            # --- CAM activation-mask tile: relu(mean_c(wsel * feat)) --------
            m = lax.dot_general(wsel_ref[0], feat,
                                (((1,), (1,)), ((), ())),
                                preferred_element_type=jnp.float32)  # (1, t_hw)
            mask_ref[0] = jnp.maximum(m * inv_cf, 0.0)

        @pl.when(t == n_hw - 1)
        def _fin():
            pooled_ref[...] *= inv_hw

    return body


def fused_stem_pool(patches, w_mat, wsel=None, *, t_hw):
    """Fused stem conv + swish + avg-pool (+ optional CAM mask).

    patches : (B, HW, K)   im2col stem patches (K = Cin*9)
    w_mat   : (K, Cf)      stem conv weight, flattened & transposed
    wsel    : (B, 1, Cf)   per-batch CAM weight row, or None (logits-only path)

    Returns (pooled (B, Cf), mask (B, 1, HW)) if wsel is given, else pooled.
    """
    B, HW, K = patches.shape
    Cf = w_mat.shape[1]
    assert HW % t_hw == 0, "HW must be divisible by t_hw"
    assert t_hw == HW or t_hw % 128 == 0, "t_hw must be lane-dense or full HW"
    n_hw = HW // t_hw
    with_mask = wsel is not None

    kernel = _make_kernel(t_hw, n_hw, HW, Cf, with_mask)

    in_specs = [pl.BlockSpec((1, t_hw, K), lambda b, t: (b, t, 0)),   # patches tile
                pl.BlockSpec((K, Cf),      lambda b, t: (0, 0))]      # stem weight
    inputs = [patches, w_mat]
    out_shape = [jax.ShapeDtypeStruct((B, 1, Cf), jnp.float32)]       # pooled
    out_specs = [pl.BlockSpec((1, 1, Cf), lambda b, t: (b, 0, 0))]
    if with_mask:
        in_specs.append(pl.BlockSpec((1, 1, Cf), lambda b, t: (b, 0, 0)))  # wsel
        inputs.append(wsel)
        out_shape.append(jax.ShapeDtypeStruct((B, 1, HW), jnp.float32))    # mask
        out_specs.append(pl.BlockSpec((1, 1, t_hw), lambda b, t: (b, 0, t)))

    outs = pl.pallas_call(
        kernel,
        out_shape=tuple(out_shape),
        grid=(B, n_hw),
        in_specs=in_specs,
        out_specs=tuple(out_specs),
        compiler_params=pltpu.CompilerParams(
            dimension_semantics=("parallel", "arbitrary")),
    )(*inputs)

    pooled = outs[0][:, 0, :]                                         # (B, Cf)
    if with_mask:
        return pooled, outs[1]
    return pooled


# ------------------------------- glue / model -------------------------------

def _im2col_stem(x, w_stem):
    """im2col for a 3x3 / stride-2 / pad-1 conv (EfficientNet stem, no bias).

    Patch flatten order is (cin, kh, kw), matching w_stem.reshape(Cf, Cin*9).
    """
    B, Cin, H, W = x.shape
    Cf = w_stem.shape[0]
    Hs, Ws = (H + 2 - 3) // 2 + 1, (W + 2 - 3) // 2 + 1
    xp = jnp.pad(x, ((0, 0), (0, 0), (1, 1), (1, 1)))
    cols = [xp[:, :, kh:kh + 2 * Hs:2, kw:kw + 2 * Ws:2]
            for kh in range(3) for kw in range(3)]            # 9 x (B,Cin,Hs,Ws)
    patches = jnp.stack(cols, axis=2)                         # (B, Cin, 9, Hs, Ws)
    patches = patches.transpose(0, 3, 4, 1, 2).reshape(B, Hs * Ws, Cin * 9)
    w_mat = w_stem.reshape(Cf, Cin * 9).T                     # (Cin*9, Cf)
    return patches, w_mat, (Hs, Ws)


def _pick_t_hw(hw, target=512):
    """Largest lane-dense (multiple-of-128) divisor of hw that is <= target."""
    if hw % 128 != 0:
        return hw                      # single full-row tile (block == full dim)
    t = min(target, hw)
    t -= t % 128
    while hw % t:
        t -= 128
    return t


def fpar_efficientnet_forward(params, x, lb=None, t_hw=None):
    # TODO(synk): the full pretrained EfficientNet-b7 backbone (extract_features
    # MBConv stack) is not reproduced; it is replaced by its stem (3x3 stride-2
    # conv, pad 1, no bias) + swish, implemented as an im2col matmul in-kernel.
    B = x.shape[0]
    patches, w_mat, (Hs, Ws) = _im2col_stem(x, params["w_stem"])
    HW = Hs * Ws
    if t_hw is None:
        t_hw = _pick_t_hw(HW)

    mask = None
    if lb is not None:
        idx = jnp.argmax(lb, axis=1)
        # CAM weights reassociated:  (fc.W @ net._fc.W)[argmax] == fc.W[argmax] @ net._fc.W
        wsel = jnp.dot(params["fc_w"][idx], params["net_fc_w"],
                       precision=HIGHEST)                          # (B, Cf)
        pooled, mask = fused_stem_pool(patches, w_mat,
                                       wsel.reshape(B, 1, -1), t_hw=t_hw)
    else:
        pooled = fused_stem_pool(patches, w_mat, None, t_hw=t_hw)

    # FC head hoisted out of the kernel: one batched M=B matmul per layer.
    # (dropout = identity at inference)
    h = jnp.dot(pooled, params["net_fc_w"].T, precision=HIGHEST) + params["net_fc_b"]
    logits = jnp.dot(h, params["fc_w"].T, precision=HIGHEST) + params["fc_b"]

    if lb is not None:
        return logits, mask.reshape(B, 1, Hs, Ws)
    return logits


# ------------------------------ pure-JAX reference --------------------------

def reference_forward(params, x, lb):
    feat = lax.conv_general_dilated(
        x, params["w_stem"], window_strides=(2, 2), padding=((1, 1), (1, 1)),
        dimension_numbers=("NCHW", "OIHW", "NCHW"), precision=HIGHEST)
    feat = feat * jax.nn.sigmoid(feat)                        # (B, Cf, Hs, Ws)
    wcam = jnp.dot(params["fc_w"], params["net_fc_w"], precision=HIGHEST)
    wsel = wcam[jnp.argmax(lb, axis=1)]                       # (B, Cf)
    mask = jax.nn.relu(jnp.mean(wsel[:, :, None, None] * feat, axis=1,
                                keepdims=True))
    pooled = jnp.mean(feat, axis=(2, 3))
    h = jnp.dot(pooled, params["net_fc_w"].T, precision=HIGHEST) + params["net_fc_b"]
    logits = jnp.dot(h, params["fc_w"].T, precision=HIGHEST) + params["fc_b"]
    return logits, mask


# ----------------------------------- main ------------------------------------

if __name__ == "__main__":
    B, Cin, H, W = 2, 1, 32, 32       # in_channels=1 as in the module spec
    Cf, H1, NC = 256, 1000, 10        # Cf is 2560 for real b7; shrunk for demo

    key = jax.random.PRNGKey(0)
    k = jax.random.split(key, 6)
    params = {
        "w_stem":   jax.random.normal(k[0], (Cf, Cin, 3, 3), jnp.float32) * 0.3,
        "net_fc_w": jax.random.normal(k[1], (H1, Cf), jnp.float32) * 0.05,
        "net_fc_b": jax.random.normal(k[2], (H1,), jnp.float32) * 0.05,
        "fc_w":     jax.random.normal(k[3], (NC, H1), jnp.float32) * 0.05,
        "fc_b":     jax.random.normal(k[4], (NC,), jnp.float32) * 0.05,
    }
    x = jax.random.normal(k[5], (B, Cin, H, W), jnp.float32)
    lb = jax.nn.one_hot(jnp.arange(B) % NC, NC, dtype=jnp.float32)

    ref_logits, ref_mask = reference_forward(params, x, lb)

    # t_hw=128 -> HW=256 splits into 2 tiles, exercising the multi-step
    # pooled-sum accumulation and the pl.when init / finalize.
    fwd = jax.jit(lambda p, xx, ll: fpar_efficientnet_forward(p, xx, ll, t_hw=128))
    logits, mask = jax.block_until_ready(fwd(params, x, lb))
    assert logits.shape == (B, NC)
    assert mask.shape == (B, 1, H // 2, W // 2)
    np.testing.assert_allclose(np.asarray(logits), np.asarray(ref_logits),
                               rtol=2e-2, atol=2e-3)
    np.testing.assert_allclose(np.asarray(mask), np.asarray(ref_mask),
                               rtol=2e-2, atol=1e-3)

    # Default auto tile size (single full-HW tile here) with the mask path.
    fwd_auto = jax.jit(lambda p, xx, ll: fpar_efficientnet_forward(p, xx, ll))
    logits2, mask2 = jax.block_until_ready(fwd_auto(params, x, lb))
    np.testing.assert_allclose(np.asarray(logits2), np.asarray(ref_logits),
                               rtol=2e-2, atol=2e-3)
    np.testing.assert_allclose(np.asarray(mask2), np.asarray(ref_mask),
                               rtol=2e-2, atol=1e-3)

    # lb=None path: logits-only kernel variant (no mask compute / writeback).
    logits_only = jax.block_until_ready(
        jax.jit(lambda p, xx: fpar_efficientnet_forward(p, xx, None))(params, x))
    np.testing.assert_allclose(np.asarray(logits_only), np.asarray(ref_logits),
                               rtol=2e-2, atol=2e-3)

    print("KERNEL_OK")
</pallas_src>

<mosaic_0001>
module attributes {stable_mosaic.version = 11 : i64} {
  func.func @body(%arg0: i32, %arg1: i32, %arg2: memref<1x128x9xf32, #tpu.memory_space<vmem>>, %arg3: memref<9x256xf32, #tpu.memory_space<vmem>>, %arg4: memref<1x1x256xf32, #tpu.memory_space<vmem>>, %arg5: memref<1x1x256xf32, #tpu.memory_space<vmem>>, %arg6: memref<1x1x128xf32, #tpu.memory_space<vmem>>) attributes {dimension_semantics = [#tpu.dimension_semantics<parallel>, #tpu.dimension_semantics<arbitrary>], iteration_bounds = array<i64: 2, 2>, scalar_prefetch = 0 : i64, scratch_operands = 0 : i64, tpu.core_type = #tpu.core_type<tc>, window_params = [{transform_indices = @transform_0, window_bounds = array<i64: 1, 128, 9>}, {pipeline_mode = #tpu.pipeline_mode<synchronous>, transform_indices = @transform_1, window_bounds = array<i64: 9, 256>}, {transform_indices = @transform_2, window_bounds = array<i64: 1, 1, 256>}, {transform_indices = @transform_3, window_bounds = array<i64: 1, 1, 256>}, {transform_indices = @transform_4, window_bounds = array<i64: 1, 1, 128>}]} {
    %c0_i32 = arith.constant 0 : i32
    %0 = arith.cmpi eq, %arg1, %c0_i32 : i32
    %1 = arith.extui %0 : i1 to i32
    %c0_i32_0 = arith.constant 0 : i32
    %2 = arith.cmpi ne, %1, %c0_i32_0 : i32
    scf.if %2 {
      %cst_24 = arith.constant 0.000000e+00 : f32
      %34 = vector.broadcast %cst_24 : f32 to vector<1x1x256xf32>
      %c0_25 = arith.constant 0 : index
      %c0_26 = arith.constant 0 : index
      %c0_27 = arith.constant 0 : index
      %35 = vector.load %arg5[%c0_25, %c0_26, %c0_27] : memref<1x1x256xf32, #tpu.memory_space<vmem>>, vector<1x1x256xf32>
      tpu.vector_store %arg5[%c0_25, %c0_26, %c0_27], %34 {strides = array<i32>} : memref<1x1x256xf32, #tpu.memory_space<vmem>>, vector<1x1x256xf32>,
    } else {
    }
    %c0 = arith.constant 0 : index
    %c0_1 = arith.constant 0 : index
    %c0_2 = arith.constant 0 : index
    %3 = vector.load %arg2[%c0, %c0_1, %c0_2] : memref<1x128x9xf32, #tpu.memory_space<vmem>>, vector<1x128x9xf32>
    %4 = vector.shape_cast %3 : vector<1x128x9xf32> to vector<128x9xf32>
    %c0_3 = arith.constant 0 : index
    %c0_4 = arith.constant 0 : index
    %5 = vector.load %arg3[%c0_3, %c0_4] : memref<9x256xf32, #tpu.memory_space<vmem>>, vector<9x256xf32>
    %cst = arith.constant dense<0.000000e+00> : vector<128x256xf32>
    %6 = tpu.matmul %4, %5, %cst {dimension_numbers = #tpu.dot_dimension_numbers<[1], [0], [0], [1], [0, 0, 1, 1], [], []>} : vector<128x9xf32>, vector<9x256xf32>, vector<128x256xf32> -> vector<128x256xf32>
    %7 = arith.negf %6 : vector<128x256xf32>
    %8 = math.exp %7 : vector<128x256xf32>
    %cst_5 = arith.constant 1.000000e+00 : f32
    %9 = vector.broadcast %cst_5 : f32 to vector<128x256xf32>
    %10 = arith.addf %9, %8 : vector<128x256xf32>
    %11 = arith.divf %9, %10 : vector<128x256xf32>
    %12 = arith.mulf %6, %11 : vector<128x256xf32>
    %cst_6 = arith.constant 1.000000e+00 : f32
    %13 = vector.broadcast %cst_6 : f32 to vector<1x128xf32>
    %c0_7 = arith.constant 0 : index
    %c0_8 = arith.constant 0 : index
    %c0_9 = arith.constant 0 : index
    %14 = vector.load %arg5[%c0_7, %c0_8, %c0_9] : memref<1x1x256xf32, #tpu.memory_space<vmem>>, vector<1x1x256xf32>
    %15 = vector.shape_cast %14 : vector<1x1x256xf32> to vector<1x256xf32>
    %cst_10 = arith.constant dense<0.000000e+00> : vector<1x256xf32>
    %16 = tpu.matmul %13, %12, %cst_10 {dimension_numbers = #tpu.dot_dimension_numbers<[1], [0], [0], [1], [0, 0, 1, 1], [], []>} : vector<1x128xf32>, vector<128x256xf32>, vector<1x256xf32> -> vector<1x256xf32>
    %17 = arith.addf %15, %16 : vector<1x256xf32>
    %c0_11 = arith.constant 0 : index
    %c0_12 = arith.constant 0 : index
    %c0_13 = arith.constant 0 : index
    %18 = vector.load %arg5[%c0_11, %c0_12, %c0_13] : memref<1x1x256xf32, #tpu.memory_space<vmem>>, vector<1x1x256xf32>
    %19 = vector.shape_cast %18 : vector<1x1x256xf32> to vector<1x256xf32>
    %20 = vector.shape_cast %17 : vector<1x256xf32> to vector<1x1x256xf32>
    tpu.vector_store %arg5[%c0_11, %c0_12, %c0_13], %20 {strides = array<i32>} : memref<1x1x256xf32, #tpu.memory_space<vmem>>, vector<1x1x256xf32>,
    %c0_14 = arith.constant 0 : index
    %c0_15 = arith.constant 0 : index
    %c0_16 = arith.constant 0 : index
    %21 = vector.load %arg4[%c0_14, %c0_15, %c0_16] : memref<1x1x256xf32, #tpu.memory_space<vmem>>, vector<1x1x256xf32>
    %22 = vector.shape_cast %21 : vector<1x1x256xf32> to vector<1x256xf32>
    %cst_17 = arith.constant dense<0.000000e+00> : vector<1x128xf32>
    %23 = tpu.matmul %22, %12, %cst_17 {dimension_numbers = #tpu.dot_dimension_numbers<[1], [1], [0], [0], [0, 0, 1, 0], [], []>} : vector<1x256xf32>, vector<128x256xf32>, vector<1x128xf32> -> vector<1x128xf32>
    %cst_18 = arith.constant 3.906250e-03 : f32
    %24 = vector.broadcast %cst_18 : f32 to vector<1x128xf32>
    %25 = arith.mulf %23, %24 : vector<1x128xf32>
    %cst_19 = arith.constant 0.000000e+00 : f32
    %26 = vector.broadcast %cst_19 : f32 to vector<1x128xf32>
    %27 = arith.maximumf %25, %26 : vector<1x128xf32>
    %c0_20 = arith.constant 0 : index
    %c0_21 = arith.constant 0 : index
    %c0_22 = arith.constant 0 : index
    %28 = vector.load %arg6[%c0_20, %c0_21, %c0_22] : memref<1x1x128xf32, #tpu.memory_space<vmem>>, vector<1x1x128xf32>
    %29 = vector.shape_cast %28 : vector<1x1x128xf32> to vector<1x128xf32>
    %30 = vector.shape_cast %27 : vector<1x128xf32> to vector<1x1x128xf32>
    tpu.vector_store %arg6[%c0_20, %c0_21, %c0_22], %30 {strides = array<i32>} : memref<1x1x128xf32, #tpu.memory_space<vmem>>, vector<1x1x128xf32>,
    %c1_i32 = arith.constant 1 : i32
    %31 = arith.cmpi eq, %arg1, %c1_i32 : i32
    %32 = arith.extui %31 : i1 to i32
    %c0_i32_23 = arith.constant 0 : i32
    %33 = arith.cmpi ne, %32, %c0_i32_23 : i32
    scf.if %33 {
      %c0_24 = arith.constant 0 : index
      %c0_25 = arith.constant 0 : index
      %c0_26 = arith.constant 0 : index
      %34 = vector.load %arg5[%c0_24, %c0_25, %c0_26] : memref<1x1x256xf32, #tpu.memory_space<vmem>>, vector<1x1x256xf32>
      %cst_27 = arith.constant 3.906250e-03 : f32
      %35 = vector.broadcast %cst_27 : f32 to vector<1x1x256xf32>
      %36 = arith.mulf %34, %35 : vector<1x1x256xf32>
      %c0_28 = arith.constant 0 : index
      %c0_29 = arith.constant 0 : index
      %c0_30 = arith.constant 0 : index
      %37 = vector.load %arg5[%c0_28, %c0_29, %c0_30] : memref<1x1x256xf32, #tpu.memory_space<vmem>>, vector<1x1x256xf32>
      tpu.vector_store %arg5[%c0_28, %c0_29, %c0_30], %36 {strides = array<i32>} : memref<1x1x256xf32, #tpu.memory_space<vmem>>, vector<1x1x256xf32>,
    } else {
    }
    return
  }
  func.func @transform_0(%arg0: i32, %arg1: i32) -> (i32, i32, i32) {
    %c0_i32 = arith.constant 0 : i32
    %c0_i32_0 = arith.constant 0 : i32
    return %arg0, %arg1, %c0_i32 : i32, i32, i32
  }
  func.func @transform_1(%arg0: i32, %arg1: i32) -> (i32, i32) {
    %c0_i32 = arith.constant 0 : i32
    %c0_i32_0 = arith.constant 0 : i32
    %c0_i32_1 = arith.constant 0 : i32
    return %c0_i32, %c0_i32_0 : i32, i32
  }
  func.func @transform_2(%arg0: i32, %arg1: i32) -> (i32, i32, i32) {
    %c0_i32 = arith.constant 0 : i32
    %c0_i32_0 = arith.constant 0 : i32
    %c0_i32_1 = arith.constant 0 : i32
    return %arg0, %c0_i32, %c0_i32_0 : i32, i32, i32
  }
  func.func @transform_3(%arg0: i32, %arg1: i32) -> (i32, i32, i32) {
    %c0_i32 = arith.constant 0 : i32
    %c0_i32_0 = arith.constant 0 : i32
    %c0_i32_1 = arith.constant 0 : i32
    return %arg0, %c0_i32, %c0_i32_0 : i32, i32, i32
  }
  func.func @transform_4(%arg0: i32, %arg1: i32) -> (i32, i32, i32) {
    %c0_i32 = arith.constant 0 : i32
    %c0_i32_0 = arith.constant 0 : i32
    return %arg0, %c0_i32, %arg1 : i32, i32, i32
  }
}

</mosaic_0001>

<bundles_post_ra>
// kernel: _lambda_.1
= control target key start
LH: loop header
LB: loop body
LE: loop exit
PB: predicated region body
PF: predicated region fallthrough
CT: control target
= control target key end

     0   :  { %s1347_s15 = smov 0   ;;  %s1349_s16 = smov 0   ;;  %s1652_s0 = inlined_call_operand.vmem [shape: f32[2,256,9], index: 0, kind: input, shape index: {}]   ;;  %s1653_s1 = inlined_call_operand.vmem [shape: f32[9,256], index: 1, kind: input, shape index: {}]   ;;  %s1654_s2 = inlined_call_operand.vmem [shape: f32[2,1,256], index: 2, kind: input, shape index: {}]   ;;  %s1655_s3 = inlined_call_operand.vmem [shape: f32[2,1,256], index: 3, kind: output, shape index: {0}]   ;;  %s1656_s4 = inlined_call_operand.vmem [shape: f32[2,1,256], index: 4, kind: output, shape index: {1}]  }
   0x1   :  { %s1351_s17 = smov 0   ;;  %s1353_s18 = smov 0  }
   0x2   :  { %s1355_s19 = smov 0  }
   0x3 LB: > { %s24_s20 = sadd.s32 1, %s1308_s17  ;;  %s27_s21 = sadd.s32 1, %s1312_s18  ;;  %s1316_s19 = sphi %s1355_s19, %s15_s19   ;;  %s1312_s18 = sphi %s1353_s18, %s1675_s18   ;;  %s1308_s17 = sphi %s1351_s17, %s1674_s17   ;;  %s1304_s16 = sphi %s1349_s16, %s1673_s16   ;;  %s1300_s15 = sphi %s1347_s15, %s1672_s15  }
   0x4   : > { %p25_p0 = scmp.ge.s32.totalorder %s24_s20, 2  ;;  %p1045_p1 = scmp.ge.s32.totalorder %s1316_s19, 1 }
   0x5   : > { %p195_p2 = scmp.lt.s32.totalorder %s1316_s19, 5 }
   0x6   : > { %s1677_s20 = smov (%p25_p0, %s24_s20), 0  ;;  %s1679_s21 = smov (!%p25_p0, %s27_s21), %s1312_s18 }
   0x7   : > { %p196_p3 = pnand %p1045_p1, %p195_p2  ;;  %p29_p4 = scmp.ge.s32.totalorder %s1679_s21, 2 }
   0x9   : > { %s1681_s21 = smov (%p29_p4, %s1679_s21), 0  ;;  %199 = sbr.rel (%p196_p3) target bundleno = 591 (0x24f), region = 32 }
   0xe   : > { %s1046_s22 = sshll.u32 %s1300_s15, 4  ;;  %p236_p5 = scmp.lt.s32.totalorder %s1304_s16, 1 }
   0xf   : > { %p238_p6 = scmp.lt.s32.totalorder %s1046_s22, 31  ;;  %p255_p7 = scmp.lt.s32.totalorder %s1300_s15, 1 }
  0x10   : > { %s1683_s16 = smov (!%p236_p5, %s1304_s16), 1  ;;  %p1052_p8 = scmp.ne.s32.totalorder %s1300_s15, 0 }
  0x11   : > { %s1685_s22 = smov (!%p238_p6, %s1046_s22), 31  ;;  %s1047_s23 = sshll.u32 %s1683_s16, 5 }
  0x12   : > { %s1381_s24 = sshll.u32 %s1683_s16, 1  ;;  %s241_s25 = sadd.s32 %s1047_s23, %s1685_s22 }
  0x13   : > { %s248_s28 = scalar_lea.vmem %s1654_s2, %s1381_s24  ;;  %s1048_s29 = sshll.u32 %s241_s25, 3 }
  0x14   : > { %s1391_s6 = scalar_lea.vmem %s1655_s3, %s1381_s24  ;;  %s1396_s9 = scalar_lea.vmem %s1652_s0, %s1048_s29 }
  0x15   : > { %s256_s10 = scalar_select %p255_p7, %s1300_s15, 1 }
  0x16   : > { %263 = sbr.rel (%p1052_p8) target bundleno = 31 (0x1f), region = 36 }
  0x17   : > { %s258_s11 = sadd.s32 %s1381_s24, %s256_s10 }
  0x18   : > { %s1403_s14 = scalar_lea.vmem %s1656_s4, %s258_s11 }
  0x1b   : > { %v264_v0 = vlaneseq  ;;  %v1318_v1 = vmov 0.0  }
  0x1d   : > { %vm266_vm0 = vcmp.lt.s32.totalorder %v264_v0, 256 }
  0x1e   : > { %268 = vst.msk [vmem:[%s1391_s6] sm:$0x3] %vm266_vm0, %v1318_v1 }
  0x1f PF: > { %v288_v2 = vld [vmem:[%s1653_s1 + $0x18] sm:$0x1]  ;;  %vm338_vm1 = vcmask 1040384   ;;  %v287_v3 = vld [vmem:[%s1653_s1 + $0x10] sm:$0x1]  ;;  %v286_v4 = vld [vmem:[%s1653_s1 + $0x8] sm:$0xff]  ;;  %v1657_v36 = vlaneseq }
  0x20   : > { %1053 = vmatprep.subr.msk.mxu0 %vm338_vm1, %v288_v2  ;;  %v285_v5 = vld [vmem:[%s1653_s1] sm:$0xff]  ;;  %v1319_v6 = vmov 0.0   ;;  %vm289_vm2 = vcmask 72704   ;;  %v270_v8 = vld [vmem:[%s1396_s9 + $0x8] sm:$0xff]  ;;  %v271_v9 = vld [vmem:[%s1396_s9 + $0x10] sm:$0xff]  ;;  %p1103_p9 = scmp.ne.s32.totalorder %s1300_s15, 1 }
  0x21   : > { %1054 = vmatpush1.msk.msra.mxu0 %vm338_vm1, %v287_v3  ;;  %409 = vmatprep.mubr.f32.mxu0 %v1319_v6  ;;  %v269_v7 = vld [vmem:[%s1396_s9] sm:$0xff]  ;;  %v272_v10 = vld [vmem:[%s1396_s9 + $0x18] sm:$0xff]  ;;  %v274_v12 = vld [vmem:[%s1396_s9 + $0x28] sm:$0xff]  ;;  %v1480_v38 = vshrl.u32 %v1657_v36, 7 }
  0x22   : > { %375 = vmatprep.subr.mxu0 %v286_v4  ;;  %795 = vmatprep.mubr.f32.mxu1 %v1319_v6  ;;  %v273_v11 = vld [vmem:[%s1396_s9 + $0x20] sm:$0xff]  ;;  %v275_v13 = vld [vmem:[%s1396_s9 + $0x30] sm:$0xff]  ;;  %v276_v14 = vld [vmem:[%s1396_s9 + $0x38] sm:$0xff] }
  0x23   : > { %376 = vmatpush1.msra.mxu0 %v285_v5  ;;  %v277_v15 = vld [vmem:[%s1396_s9 + $0x40] sm:$0xff]  ;;  %v278_v16 = vld [vmem:[%s1396_s9 + $0x48] sm:$0xff]  ;;  %v279_v17 = vld [vmem:[%s1396_s9 + $0x50] sm:$0xff]  ;;  %1665 = vst [vmem:[#allocation4_spill] sm:$0xff] %v1480_v38  ;;  %v834_v40 = vsub.s32 1, %v1480_v38 }
  0x24   : > { %1055 = vmatmul.mubr.msk.f32.vlgmr.msra.gmra.mxu0 %vm289_vm2, %v269_v7  ;;  %v280_v18 = vld [vmem:[%s1396_s9 + $0x58] sm:$0xff]  ;;  %v281_v19 = vld [vmem:[%s1396_s9 + $0x60] sm:$0xff]  ;;  %v282_v20 = vld [vmem:[%s1396_s9 + $0x68] sm:$0xff] }
  0x25   : > { %415 = vmatprep.mubr.f32.mxu0 %v1319_v6  ;;  %v283_v21 = vld [vmem:[%s1396_s9 + $0x70] sm:$0xff]  ;;  %v284_v22 = vld [vmem:[%s1396_s9 + $0x78] sm:$0xff]  ;;  %v1492_v42 = vld [vmem:[%s248_s28] sm:$0x3] }
  0x26   : > { %1666 = vst [vmem:[#allocation5_spill] sm:$0xff] %v1492_v42  ;;  %v835_v43 = vrot.slane %v1492_v42, %v834_v40 }
  0x28   : > { %1056 = vmatmul.mubr.msk.f32.gmra.mxu0 %vm289_vm2, %v270_v8 }
  0x29   : > { %421 = vmatprep.mubr.f32.mxu0 %v1319_v6 }
  0x2c   : > { %1057 = vmatmul.mubr.msk.f32.gmra.mxu0 %vm289_vm2, %v271_v9 }
  0x2d   : > { %427 = vmatprep.mubr.f32.mxu0 %v1319_v6 }
  0x30   : > { %1058 = vmatmul.mubr.msk.f32.gmra.mxu0 %vm289_vm2, %v272_v10 }
  0x31   : > { %433 = vmatprep.mubr.f32.mxu0 %v1319_v6 }
  0x34   : > { %1059 = vmatmul.mubr.msk.f32.gmra.mxu0 %vm289_vm2, %v273_v11 }
  0x35   : > { %439 = vmatprep.mubr.f32.mxu0 %v1319_v6 }
  0x38   : > { %1060 = vmatmul.mubr.msk.f32.gmra.mxu0 %vm289_vm2, %v274_v12 }
  0x39   : > { %445 = vmatprep.mubr.f32.mxu0 %v1319_v6 }
  0x3c   : > { %1061 = vmatmul.mubr.msk.f32.gmra.mxu0 %vm289_vm2, %v275_v13 }
  0x3d   : > { %451 = vmatprep.mubr.f32.mxu0 %v1319_v6 }
  0x40   : > { %1062 = vmatmul.mubr.msk.f32.gmra.mxu0 %vm289_vm2, %v276_v14 }
  0x41   : > { %457 = vmatprep.mubr.f32.mxu0 %v1319_v6 }
  0x44   : > { %1063 = vmatmul.mubr.msk.f32.gmra.mxu0 %vm289_vm2, %v277_v15 }
  0x45   : > { %463 = vmatprep.mubr.f32.mxu0 %v1319_v6 }
  0x48   : > { %1064 = vmatmul.mubr.msk.f32.gmra.mxu0 %vm289_vm2, %v278_v16 }
  0x49   : > { %469 = vmatprep.mubr.f32.mxu0 %v1319_v6 }
  0x4c   : > { %1065 = vmatmul.mubr.msk.f32.gmra.mxu0 %vm289_vm2, %v279_v17 }
  0x4d   : > { %475 = vmatprep.mubr.f32.mxu0 %v1319_v6 }
  0x50   : > { %1066 = vmatmul.mubr.msk.f32.gmra.mxu0 %vm289_vm2, %v280_v18 }
  0x51   : > { %481 = vmatprep.mubr.f32.mxu0 %v1319_v6 }
  0x54   : > { %1067 = vmatmul.mubr.msk.f32.gmra.mxu0 %vm289_vm2, %v281_v19 }
  0x55   : > { %487 = vmatprep.mubr.f32.mxu0 %v1319_v6 }
  0x58   : > { %1068 = vmatmul.mubr.msk.f32.gmra.mxu0 %vm289_vm2, %v282_v20 }
  0x59   : > { %493 = vmatprep.mubr.f32.mxu0 %v1319_v6 }
  0x5c   : > { %1069 = vmatmul.mubr.msk.f32.gmra.mxu0 %vm289_vm2, %v283_v21 }
  0x5d   : > { %499 = vmatprep.mubr.f32.mxu0 %v1319_v6 }
  0x60   : > { %1070 = vmatmul.mubr.msk.f32.gmra.mxu0 %vm289_vm2, %v284_v22 }
  0x61   : > { %902 = vmatprep.mubr.f32.mxu0 %v835_v43 }
  0xe4   : > { %v1451_v23 = vpop.f32.mrf.mxu0 }
  0xe5   : > { %1663 = vst [vmem:[#allocation2_spill] sm:$0xff] %v1451_v23  ;;  %v1071_v50 = vmul.f32 -1.442695, %v1451_v23 }
  0xe6   : > { %v1453_v24 = vpop.f32.mrf.mxu0 }
  0xe7   : > { %1664 = vst [vmem:[#allocation3_spill] sm:$0xff] %v1453_v24  ;;  %v1072_v52 = vmul.f32 -1.442695, %v1453_v24  ;;  %1150 = vpow2.f32 %v1071_v50 }
  0xe8   : > { %v1455_v25 = vpop.f32.mrf.mxu0 }
  0xe9   : > { %v1073_v53 = vmul.f32 -1.442695, %v1455_v25  ;;  %1152 = vpow2.f32 %v1072_v52 }
  0xea   : > { %v1457_v26 = vpop.f32.mrf.mxu0 }
  0xeb   : > { %v1074_v55 = vmul.f32 -1.442695, %v1457_v26  ;;  %1154 = vpow2.f32 %v1073_v53 }
  0xec   : > { %v1459_v27 = vpop.f32.mrf.mxu0 }
  0xed   : > { %v1075_v56 = vmul.f32 -1.442695, %v1459_v27  ;;  %1156 = vpow2.f32 %v1074_v55 }
  0xee   : > { %v1461_v28 = vpop.f32.mrf.mxu0 }
  0xef   : > { %v1076_v58 = vmul.f32 -1.442695, %v1461_v28  ;;  %1158 = vpow2.f32 %v1075_v56 }
  0xf0   : > { %v1463_v29 = vpop.f32.mrf.mxu0 }
  0xf1   : > { %v1077_v59 = vmul.f32 -1.442695, %v1463_v29  ;;  %1160 = vpow2.f32 %v1076_v58 }
  0xf2   : > { %v1465_v30 = vpop.f32.mrf.mxu0 }
  0xf3   : > { %v1078_v61 = vmul.f32 -1.442695, %v1465_v30  ;;  %1162 = vpow2.f32 %v1077_v59 }
  0xf4   : > { %v1467_v31 = vpop.f32.mrf.mxu0  ;;  %v1541_v11 = vpop.eup %1150 }
  0xf5   : > { %v1079_v62 = vmul.f32 -1.442695, %v1467_v31  ;;  %1164 = vpow2.f32 %v1078_v61 }
  0xf6   : > { %v1469_v32 = vpop.f32.mrf.mxu0  ;;  %v1545_v14 = vpop.eup %1152 }
  0xf7   : > { %v1080_v0 = vmul.f32 -1.442695, %v1469_v32  ;;  %1166 = vpow2.f32 %v1079_v62 }
  0xf8   : > { %v1471_v33 = vpop.f32.mrf.mxu0  ;;  %v1549_v16 = vpop.eup %1154 }
  0xf9   : > { %v1081_v1 = vmul.f32 -1.442695, %v1471_v33  ;;  %1168 = vpow2.f32 %v1080_v0 }
  0xfa   : > { %v1473_v34 = vpop.f32.mrf.mxu0  ;;  %v1553_v19 = vpop.eup %1156 }
  0xfb   : > { %v1082_v3 = vmul.f32 -1.442695, %v1473_v34  ;;  %1170 = vpow2.f32 %v1081_v1 }
  0xfc   : > { %v1475_v35 = vpop.f32.mrf.mxu0  ;;  %v1556_v21 = vpop.eup %1158 }
  0xfd   : > { %1172 = vpow2.f32 %v1082_v3 }
  0xfe   : > { %v1477_v37 = vpop.f32.mrf.mxu0  ;;  %v1559_v40 = vpop.eup %1160 }
 0x100   : > { %v1482_v39 = vpop.f32.mrf.mxu0  ;;  %v1562_v50 = vpop.eup %1162 }
 0x102   : > { %v1485_v41 = vpop.f32.mrf.mxu0  ;;  %v1565_v53 = vpop.eup %1164 }
 0x103   : > { %v1086_v3 = vmul.f32 -1.442695, %v1485_v41 }
 0x104   : > { %v1495_v44 = vpop.f32.mrf.mxu0  ;;  %v1568_v56 = vpop.eup %1166 }
 0x105   : > { %v1087_v0 = vmul.f32 -1.442695, %v1495_v44 }
 0x106   : > { %v1497_v45 = vpop.f32.mrf.mxu0  ;;  %v1571_v59 = vpop.eup %1168 }
 0x107   : > { %v1088_v61 = vmul.f32 -1.442695, %v1497_v45 }
 0x108   : > { %v1499_v46 = vpop.f32.mrf.mxu0  ;;  %v1574_v62 = vpop.eup %1170 }
 0x109   : > { %v1089_v58 = vmul.f32 -1.442695, %v1499_v46 }
 0x10a   : > { %v1501_v47 = vpop.f32.mrf.mxu0  ;;  %v1577_v1 = vpop.eup %1172 }
 0x10b   : > { %v1090_v55 = vmul.f32 -1.442695, %v1501_v47 }
 0x10c   : > { %v1503_v48 = vpop.f32.mrf.mxu0 }
 0x10d   : > { %v1091_v52 = vmul.f32 -1.442695, %v1503_v48 }
 0x10e   : > { %v1505_v49 = vpop.f32.mrf.mxu0 }
 0x10f   : > { %v1092_v43 = vmul.f32 -1.442695, %v1505_v49 }
 0x110   : > { %v1508_v51 = vpop.f32.mrf.mxu0 }
 0x111   : > { %v1093_v22 = vmul.f32 -1.442695, %v1508_v51 }
 0x112   : > { %v1512_v54 = vpop.f32.mrf.mxu0 }
 0x113   : > { %v1094_v20 = vmul.f32 -1.442695, %v1512_v54 }
 0x114   : > { %v1516_v57 = vpop.f32.mrf.mxu0 }
 0x115   : > { %v1095_v17 = vmul.f32 -1.442695, %v1516_v57 }
 0x116   : > { %v1520_v60 = vpop.f32.mrf.mxu0 }
 0x117   : > { %v1096_v4 = vmul.f32 -1.442695, %v1520_v60 }
 0x118   : > { %v1524_v63 = vpop.f32.mrf.mxu0 }
 0x119   : > { %1174 = vpow2.f32 %v1096_v4  ;;  %v1097_v12 = vmul.f32 -1.442695, %v1524_v63 }
 0x11a   : > { %v1528_v2 = vpop.f32.mrf.mxu0 }
 0x11b   : > { %v1098_v6 = vmul.f32 -1.442695, %v1528_v2 }
 0x11c   : > { %v1532_v5 = vpop.f32.mrf.mxu0 }
 0x11d   : > { %v1099_v8 = vmul.f32 -1.442695, %v1532_v5  ;;  %1176 = vpow2.f32 %v1098_v6  ;;  %v1085_v6 = vmul.f32 -1.442695, %v1482_v39 }
 0x11e   : > { %v1535_v7 = vpop.f32.mrf.mxu0 }
 0x11f   : > { %v1100_v9 = vmul.f32 -1.442695, %v1535_v7 }
 0x120   : > { %v1539_v10 = vpop.f32.mrf.mxu0 }
 0x121   : > { %v1101_v13 = vmul.f32 -1.442695, %v1539_v10  ;;  %1178 = vpow2.f32 %v1100_v9  ;;  %v1084_v9 = vmul.f32 -1.442695, %v1477_v37 }
 0x122   : > { %v1547_v15 = vpop.f32.mrf.mxu0  ;;  %1180 = vpow2.f32 %v1099_v8 }
 0x123   : > { %v1102_v18 = vmul.f32 -1.442695, %v1547_v15  ;;  %1182 = vpow2.f32 %v1101_v13  ;;  %v1083_v13 = vmul.f32 -1.442695, %v1475_v35 }
 0x124   : > { %1184 = vpow2.f32 %v1097_v12 }
 0x125   : > { %1186 = vpow2.f32 %v1102_v18 }
 0x126   : > { %1188 = vpow2.f32 %v1095_v17  ;;  %v1175_v4 = vpop.eup %1174 }
 0x127   : > { %1190 = vpow2.f32 %v1094_v20 }
 0x128   : > { %1192 = vpow2.f32 %v1093_v22 }
 0x129   : > { %1194 = vpow2.f32 %v1092_v43 }
 0x12a   : > { %1196 = vpow2.f32 %v1091_v52  ;;  %v1177_v8 = vpop.eup %1176 }
 0x12b   : > { %1198 = vpow2.f32 %v1090_v55  ;;  %v629_v36 = vadd.f32 1.0, %v1177_v8 }
 0x12c   : > { %1200 = vpow2.f32 %v1089_v58 }
 0x12d   : > { %1202 = vpow2.f32 %v1088_v61 }
 0x12e   : > { %v1179_v12 = vpop.eup %1178  ;;  %1204 = vpow2.f32 %v1087_v0  ;;  %v627_v0 = vadd.f32 1.0, %v1175_v4 }
 0x12f   : > { %v1181_v17 = vpop.eup %1180  ;;  %1206 = vpow2.f32 %v1086_v3  ;;  %v631_v18 = vadd.f32 1.0, %v1179_v12 }
 0x130   : > { %v1183_v20 = vpop.eup %1182  ;;  %1208 = vpow2.f32 %v1085_v6  ;;  %v630_v55 = vadd.f32 1.0, %v1181_v17 }
 0x131   : > { %v1185_v22 = vpop.eup %1184  ;;  %1210 = vpow2.f32 %v1084_v9  ;;  %v632_v43 = vadd.f32 1.0, %v1183_v20 }
 0x132   : > { %v1187_v52 = vpop.eup %1186  ;;  %1212 = vpow2.f32 %v1083_v13  ;;  %v628_v38 = vadd.f32 1.0, %v1185_v22 }
 0x133   : > { %v1189_v58 = vpop.eup %1188  ;;  %1214 = vrcp.f32 %v631_v18  ;;  %v633_v42 = vadd.f32 1.0, %v1187_v52 }
 0x134   : > { %v1191_v61 = vpop.eup %1190  ;;  %1216 = vrcp.f32 %v632_v43  ;;  %v626_v12 = vadd.f32 1.0, %v1189_v58 }
 0x135   : > { %v1193_v23 = vpop.eup %1192  ;;  %1218 = vrcp.f32 %v633_v42  ;;  %v625_v24 = vadd.f32 1.0, %v1191_v61 }
 0x136   : > { %v1195_v3 = vpop.eup %1194  ;;  %1220 = vrcp.f32 %v630_v55  ;;  %v624_v20 = vadd.f32 1.0, %v1193_v23 }
 0x137   : > { %v1197_v6 = vpop.eup %1196  ;;  %1222 = vrcp.f32 %v629_v36  ;;  %v623_v17 = vadd.f32 1.0, %v1195_v3 }
 0x138   : > { %v1199_v9 = vpop.eup %1198  ;;  %1224 = vrcp.f32 %v628_v38  ;;  %v622_v18 = vadd.f32 1.0, %v1197_v6 }
 0x139   : > { %v1201_v13 = vpop.eup %1200  ;;  %1226 = vrcp.f32 %v627_v0  ;;  %v621_v43 = vadd.f32 1.0, %v1199_v9 }
 0x13a   : > { %v1203_v8 = vpop.eup %1202  ;;  %1228 = vrcp.f32 %v626_v12  ;;  %v620_v42 = vadd.f32 1.0, %v1201_v13 }
 0x13b   : > { %v1205_v22 = vpop.eup %1204  ;;  %1230 = vrcp.f32 %v625_v24  ;;  %v619_v55 = vadd.f32 1.0, %v1203_v8  ;;  %v612_v8 = vadd.f32 1.0, %v1574_v62 }
 0x13c   : > { %v1207_v4 = vpop.eup %1206  ;;  %1232 = vrcp.f32 %v624_v20  ;;  %v618_v36 = vadd.f32 1.0, %v1205_v22  ;;  %v613_v20 = vadd.f32 1.0, %v1577_v1  ;;  %v610_v1 = vadd.f32 1.0, %v1568_v56 }
 0x13d   : > { %v1209_v52 = vpop.eup %1208  ;;  %1234 = vrcp.f32 %v623_v17  ;;  %v617_v38 = vadd.f32 1.0, %v1207_v4 }
 0x13e   : > { %v1211_v58 = vpop.eup %1210  ;;  %1236 = vrcp.f32 %v622_v18  ;;  %v616_v0 = vadd.f32 1.0, %v1209_v52  ;;  %v609_v52 = vadd.f32 1.0, %v1565_v53 }
 0x13f   : > { %v1213_v23 = vpop.eup %1212  ;;  %1238 = vrcp.f32 %v621_v43  ;;  %v615_v12 = vadd.f32 1.0, %v1211_v58  ;;  %v611_v43 = vadd.f32 1.0, %v1571_v59 }
 0x140   : > { %v1215_v61 = vpop.eup %1214  ;;  %1240 = vrcp.f32 %v620_v42  ;;  %v614_v24 = vadd.f32 1.0, %v1213_v23  ;;  %v605_v23 = vadd.f32 1.0, %v1553_v19 }
 0x141   : > { %v1217_v3 = vpop.eup %1216  ;;  %1242 = vrcp.f32 %v619_v55  ;;  %v727_v4 = vmul.f32 %v1215_v61, %v1535_v7  ;;  %v608_v7 = vadd.f32 1.0, %v1562_v50 }
 0x142   : > { %v1219_v6 = vpop.eup %1218  ;;  %1244 = vrcp.f32 %v618_v36  ;;  %v728_v18 = vmul.f32 %v1217_v3, %v1539_v10  ;;  %v606_v36 = vadd.f32 1.0, %v1556_v21 }
 0x143   : > { %v1221_v9 = vpop.eup %1220  ;;  %1246 = vrcp.f32 %v617_v38  ;;  %v729_v13 = vmul.f32 %v1219_v6, %v1547_v15 }
 0x144   : > { %v1223_v17 = vpop.eup %1222  ;;  %1248 = vrcp.f32 %v616_v0  ;;  %v726_v15 = vmul.f32 %v1221_v9, %v1532_v5  ;;  %v607_v5 = vadd.f32 1.0, %v1559_v40  ;;  %v602_v0 = vadd.f32 1.0, %v1541_v11 }
 0x145   : > { %v1225_v22 = vpop.eup %1224  ;;  %1250 = vrcp.f32 %v615_v12  ;;  %731 = vmatprep.subr.mxu1 %v729_v13  ;;  %838 = vmatprep.subr.mxu0 %v729_v13  ;;  %v725_v10 = vmul.f32 %v1223_v17, %v1528_v2 }
 0x146   : > { %v1227_v42 = vpop.eup %1226  ;;  %1252 = vrcp.f32 %v614_v24  ;;  %732 = vmatpush1.msra.mxu1 %v728_v18  ;;  %839 = vmatpush1.xpose.msra.mxu0 %v728_v18  ;;  %v724_v55 = vmul.f32 %v1225_v22, %v1524_v63 }
 0x147   : > { %v1229_v62 = vpop.eup %1228  ;;  %1254 = vrcp.f32 %v613_v20  ;;  %733 = vmatprep.subr.mxu1 %v727_v4  ;;  %840 = vmatprep.subr.mxu0 %v727_v4  ;;  %v723_v58 = vmul.f32 %v1227_v42, %v1520_v60  ;;  %v604_v60 = vadd.f32 1.0, %v1549_v16 }
 0x148   : > { %v1231_v59 = vpop.eup %1230  ;;  %1256 = vrcp.f32 %v612_v8  ;;  %734 = vmatpush1.msra.mxu1 %v726_v15  ;;  %v722_v2 = vmul.f32 %v1229_v62, %v1516_v57  ;;  %v603_v57 = vadd.f32 1.0, %v1545_v14  ;;  %v1667_v62 = vld [vmem:[#allocation3_spill] sm:$0xff] }
 0x149   : > { %v1233_v56 = vpop.eup %1232  ;;  %1258 = vrcp.f32 %v611_v43  ;;  %735 = vmatprep.subr.mxu1 %v725_v10  ;;  %v721_v63 = vmul.f32 %v1231_v59, %v1512_v54 }
 0x14a   : > { %v1235_v53 = vpop.eup %1234  ;;  %1260 = vrcp.f32 %v610_v1  ;;  %736 = vmatpush1.msra.mxu1 %v724_v55  ;;  %841 = vmatpush1.xpose.msra.mxu0 %v726_v15  ;;  %v720_v38 = vmul.f32 %v1233_v56, %v1508_v51 }
 0x14b   : > { %v1237_v50 = vpop.eup %1236  ;;  %1262 = vrcp.f32 %v609_v52  ;;  %737 = vmatprep.subr.mxu1 %v723_v58  ;;  %842 = vmatprep.subr.mxu0 %v725_v10  ;;  %v719_v61 = vmul.f32 %v1235_v53, %v1505_v49  ;;  %v1668_v52 = vld [vmem:[#allocation2_spill] sm:$0xff] }
 0x14c   : > { %v1239_v40 = vpop.eup %1238  ;;  %1264 = vrcp.f32 %v608_v7  ;;  %738 = vmatpush1.msra.mxu1 %v722_v2  ;;  %v718_v54 = vmul.f32 %v1237_v50, %v1503_v48  ;;  %v1321_v7 = vmov 1966171168   ;;  %v730_v50 = vld [vmem:[%s1391_s6] sm:$0x3] }
 0x14d   : > { %v1241_v21 = vpop.eup %1240  ;;  %1266 = vrcp.f32 %v607_v5  ;;  %739 = vmatprep.subr.mxu1 %v721_v63  ;;  %v717_v51 = vmul.f32 %v1239_v40, %v1501_v47 }
 0x14e   : > { %v1243_v19 = vpop.eup %1242  ;;  %1268 = vrcp.f32 %v606_v36  ;;  %740 = vmatpush1.msra.mxu1 %v720_v38  ;;  %843 = vmatpush1.xpose.msra.mxu0 %v724_v55  ;;  %v716_v14 = vmul.f32 %v1241_v21, %v1499_v46  ;;  %v806_v55 = vunpack.c.l.s4 %v1321_v7 }
 0x14f   : > { %v1245_v16 = vpop.eup %1244  ;;  %1270 = vrcp.f32 %v605_v23  ;;  %741 = vmatprep.subr.mxu1 %v719_v61  ;;  %844 = vmatprep.subr.mxu0 %v723_v58  ;;  %v715_v11 = vmul.f32 %v1243_v19, %v1497_v45 }
 0x150   : > { %v1247_v3 = vpop.eup %1246  ;;  %1272 = vrcp.f32 %v604_v60  ;;  %742 = vmatpush1.msra.mxu1 %v718_v54  ;;  %v714_v48 = vmul.f32 %v1245_v16, %v1495_v44  ;;  %v807_v56 = vunpack.c.0.s8 %v806_v55 }
 0x151   : > { %v1249_v49 = vpop.eup %1248  ;;  %1274 = vrcp.f32 %v603_v57  ;;  %743 = vmatprep.subr.mxu1 %v717_v51  ;;  %v713_v47 = vmul.f32 %v1247_v3, %v1485_v41 }
 0x152   : > { %v1251_v12 = vpop.eup %1250  ;;  %1276 = vrcp.f32 %v602_v0  ;;  %744 = vmatpush1.msra.mxu1 %v716_v14  ;;  %845 = vmatpush1.xpose.msra.mxu0 %v722_v2  ;;  %v712_v46 = vmul.f32 %v1249_v49, %v1482_v39 }
 0x153   : > { %v1253_v6 = vpop.eup %1252  ;;  %745 = vmatprep.subr.mxu1 %v715_v11  ;;  %846 = vmatprep.subr.mxu0 %v721_v63  ;;  %v711_v20 = vmul.f32 %v1251_v12, %v1477_v37  ;;  %v1671_v63 = vlaneseq }
 0x154   : > { %v1255_v24 = vpop.eup %1254  ;;  %746 = vmatpush1.msra.mxu1 %v714_v48  ;;  %v710_v13 = vmul.f32 %v1253_v6, %v1475_v35 }
 0x155   : > { %v1257_v9 = vpop.eup %1256  ;;  %747 = vmatprep.subr.mxu1 %v713_v47  ;;  %v709_v17 = vmul.f32 %v1255_v24, %v1473_v34  ;;  %vm823_vm3 = vcmp.lt.s32.totalorder %v1671_v63, 256 }
 0x156   : > { %v1259_v45 = vpop.eup %1258  ;;  %748 = vmatpush1.msra.mxu1 %v712_v46  ;;  %847 = vmatpush1.xpose.msra.mxu0 %v720_v38  ;;  %v708_v8 = vmul.f32 %v1257_v9, %v1471_v33 }
 0x157   : > { %v1261_v44 = vpop.eup %1260  ;;  %749 = vmatprep.subr.mxu1 %v711_v20  ;;  %848 = vmatprep.subr.mxu0 %v719_v61  ;;  %v707_v18 = vmul.f32 %v1259_v45, %v1469_v32 }
 0x158   : > { %v1263_v41 = vpop.eup %1262  ;;  %750 = vmatpush1.msra.mxu1 %v710_v13  ;;  %v706_v22 = vmul.f32 %v1261_v44, %v1467_v31 }
 0x159   : > { %v1265_v39 = vpop.eup %1264  ;;  %751 = vmatprep.subr.mxu1 %v709_v17  ;;  %v705_v43 = vmul.f32 %v1263_v41, %v1465_v30 }
 0x15a   : > { %v1267_v37 = vpop.eup %1266  ;;  %752 = vmatpush1.msra.mxu1 %v708_v8  ;;  %849 = vmatpush1.xpose.msra.mxu0 %v718_v54  ;;  %v704_v4 = vmul.f32 %v1265_v39, %v1463_v29 }
 0x15b   : > { %v1269_v35 = vpop.eup %1268  ;;  %753 = vmatprep.subr.mxu1 %v707_v18  ;;  %850 = vmatprep.subr.mxu0 %v717_v51  ;;  %v703_v42 = vmul.f32 %v1267_v37, %v1461_v28  ;;  %v1670_v28 = vld [vmem:[#allocation5_spill] sm:$0xff] }
 0x15c   : > { %v1271_v34 = vpop.eup %1270  ;;  %754 = vmatpush1.msra.mxu1 %v706_v22  ;;  %v702_v1 = vmul.f32 %v1269_v35, %v1459_v27  ;;  %v1320_v27 = vmov 1.0  }
 0x15d   : > { %v1273_v33 = vpop.eup %1272  ;;  %755 = vmatprep.subr.mxu1 %v705_v43  ;;  %v701_v15 = vmul.f32 %v1271_v34, %v1457_v26 }
 0x15e   : > { %v1275_v32 = vpop.eup %1274  ;;  %756 = vmatpush1.msra.mxu1 %v704_v4  ;;  %851 = vmatpush1.xpose.msra.mxu0 %v716_v14  ;;  %v700_v30 = vmul.f32 %v1273_v33, %v1455_v25  ;;  %v1669_v25 = vld [vmem:[#allocation4_spill] sm:$0xff] }
 0x15f   : > { %v1277_v31 = vpop.eup %1276  ;;  %757 = vmatprep.subr.mxu1 %v703_v42  ;;  %852 = vmatprep.subr.mxu0 %v715_v11  ;;  %v699_v29 = vmul.f32 %v1275_v32, %v1667_v62  ;;  %v830_v26 = vsub.s32 0, %v1669_v25  ;;  %v810_v58 = vsub.s32 %v807_v56, %v1669_v25 }
 0x160   : > { %758 = vmatpush1.msra.mxu1 %v702_v1  ;;  %v698_v10 = vmul.f32 %v1277_v31, %v1668_v52 }
 0x161   : > { %759 = vmatprep.subr.mxu1 %v701_v15  ;;  %v831_v59 = vrot.slane %v1670_v28, %v830_v26 }
 0x162   : > { %760 = vmatpush1.msra.mxu1 %v700_v30  ;;  %853 = vmatpush1.xpose.msra.mxu0 %v714_v48 }
 0x163   : > { %761 = vmatprep.subr.mxu1 %v699_v29  ;;  %854 = vmatprep.subr.mxu0 %v713_v47 }
 0x164   : > { %762 = vmatpush1.msra.mxu1 %v698_v10 }
 0x165   : > { %796 = vmatmul.mubr.f32.vlgmr.msra.gmra.mxu1 %v1320_v27 }
 0x166   : > { %855 = vmatpush1.xpose.msra.mxu0 %v712_v46 }
 0x167   : > { %856 = vmatprep.subr.mxu0 %v711_v20 }
 0x16a   : > { %857 = vmatpush1.xpose.msra.mxu0 %v710_v13 }
 0x16b   : > { %858 = vmatprep.subr.mxu0 %v709_v17 }
 0x16e   : > { %859 = vmatpush1.xpose.msra.mxu0 %v708_v8 }
 0x16f   : > { %860 = vmatprep.subr.mxu0 %v707_v18 }
 0x172   : > { %861 = vmatpush1.xpose.msra.mxu0 %v706_v22 }
 0x173   : > { %862 = vmatprep.subr.mxu0 %v705_v43 }
 0x176   : > { %863 = vmatpush1.xpose.msra.mxu0 %v704_v4 }
 0x177   : > { %864 = vmatprep.subr.mxu0 %v703_v42 }
 0x17a   : > { %865 = vmatpush1.xpose.msra.mxu0 %v702_v1 }
 0x17b   : > { %866 = vmatprep.subr.mxu0 %v701_v15 }
 0x17e   : > { %867 = vmatpush1.xpose.msra.mxu0 %v700_v30 }
 0x17f   : > { %868 = vmatprep.subr.mxu0 %v699_v29 }
 0x182   : > { %869 = vmatpush1.xpose.msra.mxu0 %v698_v10 }
 0x185   : > { %903 = vmatmul.mubr.f32.vlgmr.msra.gmra.mxu0 %v831_v59 }
 0x225   : > { %v797_v5 = vpop.f32.mrf.mxu1 }
 0x227   : > { %v799_v53 = vpop.f32.mrf.mxu1 }
 0x228   : > { %v804_v36 = vcombine.low %v797_v5, %v799_v53 }
 0x22a   : > { %v811_v2 = vrot.slane %v804_v36, %v810_v58 }
 0x22c   : > { %v818_v23 = vrot.slane %v811_v2, %v810_v58 }
 0x22e   : > { %v820_v40 = vadd.f32 %v818_v23, %v730_v50 }
 0x230   : > { %825 = vst.msk [vmem:[%s1391_s6] sm:$0x3] %vm823_vm3, %v820_v40 }
 0x245   : > { %v904_v60 = vpop.f32.mrf.mxu0 }
 0x246   : > { %v908_v38 = vmul.f32 0.00390625, %v904_v60  ;;  %914 = sbr.rel (%p1103_p9) target bundleno = 591 (0x24f), region = 40 }
 0x247   : > { %v906_v21 = vpop.f32.mrf.mxu0 }
 0x248   : > { %v909_v57 = vmax.f32 %v908_v38, 0.0 }
 0x24a   : > { %910 = vst [vmem:[%s1403_s14] sm:$0x1] %v909_v57 }
 0x24b   : > { %v915_v61 = vld [vmem:[%s1391_s6] sm:$0x3] }
 0x24c   : > { %v916_v19 = vmul.f32 0.00390625, %v915_v61 }
 0x24e   : > { %917 = vst.msk [vmem:[%s1391_s6] sm:$0x3] %vm823_vm3, %v916_v19 }
 0x24f PF: > { %s15_s19 = sadd.s32 1, %s1316_s19   ;;  %s1672_s15 = smov %s1308_s17 }
 0x250   : > { %p12_p10 = scmp.ge.s32.totalorder %s15_s19, 6   ;;  %s1673_s16 = smov %s1312_s18 }
 0x251   : > { %s1674_s17 = smov %s1677_s20  ;;  %s1675_s18 = smov %s1681_s21 }
 0x252   :  { %14 = sbr.rel (!%p12_p10) target bundleno = 3 (0x3), region = 85 }

</bundles_post_ra>
